<compile_context>
chip_gen: v7x
topology: tpu7x:2x2x1
jax: 0.10.0
libtpu: 0.0.40
codegen_flags: <defaults>
</compile_context>

<pallas_src>
import functools

import jax
import jax.numpy as jnp
from jax import lax
from jax.experimental import pallas as pl
from jax.experimental.pallas import tpu as pltpu


def _round_up(x, m):
    return ((x + m - 1) // m) * m


def _cdiv(a, b):
    return (a + b - 1) // b


def _lp1_kernel(prop_ref, label_ref, o_ref, *, tk, n_src, k_rem,
                label_resident, compute_dtype):
    """Grid step (i, k): o[i] += prop[i, k] @ label[k]; clamp on the last k.

    prop_ref : (tm, tk)                         streamed tile (bf16 or f32)
    label_ref: (K_lbl, c_pad) or (tk, c_pad)    resident / streamed label (bf16)
    o_ref    : (tm, c_pad) f32                  resident output block == accumulator
    """
    k = pl.program_id(1)

    @pl.when(k == 0)
    def _():
        o_ref[...] = jnp.zeros_like(o_ref)

    a = prop_ref[...]
    if a.dtype != compute_dtype:
        a = a.astype(compute_dtype)          # in-kernel cast: no wrapper HBM pass
    if k_rem:
        # K is not a multiple of tk: the last prop tile extends past n_src and
        # its OOB contents are unspecified -> mask them to zero before the MXU.
        col = k * tk + lax.broadcasted_iota(jnp.int32, (1, tk), 1)
        a = jnp.where(col < n_src, a, jnp.zeros((), dtype=a.dtype))

    if label_resident:
        start = pl.multiple_of(k * tk, tk)
        lbl = label_ref[pl.ds(start, tk), :]
    else:
        lbl = label_ref[...]

    o_ref[...] += jnp.dot(a, lbl, preferred_element_type=jnp.float32)

    @pl.when(k == pl.num_programs(1) - 1)
    def _():
        # torch.clamp(y, 0, 1)
        o_ref[...] = jnp.clip(o_ref[...], 0.0, 1.0)


def _vmem_budget_bytes():
    """~80% of per-core VMEM; fall back to the smallest generation (v7x, 64 MiB)."""
    try:
        phys = int(pltpu.get_tpu_info().vmem_capacity_bytes)
    except Exception:
        phys = 64 * 1024 * 1024
    return (phys * 4) // 5


def lp1_matmul_clamp(prop, label, *, tm=1024, tk=4096, compute_dtype=jnp.bfloat16):
    """y = clamp(prop @ label, 0, 1) via a tiled, bandwidth-optimized Pallas matmul.

    `prop` is streamed untouched (no astype / pad materialization in the
    wrapper).  Pass it pre-converted to bf16 (one-time parameter conversion)
    for minimum HBM traffic, or in f32 for an in-kernel cast.
    """
    n_dst, n_src = prop.shape
    n_src2, n_classes = label.shape
    assert n_src == n_src2

    prop_item = jnp.dtype(prop.dtype).itemsize
    lbl_item = jnp.dtype(compute_dtype).itemsize

    # Lane-dense output: pad classes to a multiple of 128 (unmasked vst stores).
    c_pad = _round_up(n_classes, 128)

    # --- tile selection ------------------------------------------------------
    tm = min(tm, _round_up(n_dst, 128))
    # Keep >= 2 row blocks so megacore (v7x: 2 TCs) can shard the parallel axis.
    if n_dst > 128 and _cdiv(n_dst, tm) < 2:
        tm = _round_up(_cdiv(n_dst, 2), 128)
    tk = min(tk, _round_up(n_src, 128))

    budget = _vmem_budget_bytes()

    def _need(tm_, tk_, resident):
        n_lbl = _round_up(n_src, tk_)
        prop_buf = 2 * tm_ * tk_ * prop_item              # double-buffered prop tile
        lbl_buf = (2 * n_lbl * c_pad * lbl_item if resident
                   else 2 * tk_ * c_pad * lbl_item)       # resident or streamed label
        out_buf = 2 * tm_ * c_pad * 4                     # f32 output / accumulator block
        temps = tm_ * tk_ * lbl_item + tm_ * c_pad * 4    # in-kernel cast/mask + dot temps
        return prop_buf + lbl_buf + out_buf + temps

    # Prefer the VMEM-resident label (fetched once).  If it does not fit the
    # per-core budget (large graphs on v7x), stream it per K step while keeping
    # the large prop tiles; only shrink tiles as a last resort.
    while True:
        if _need(tm, tk, True) <= budget:
            label_resident = True
            break
        if _need(tm, tk, False) <= budget:
            label_resident = False
            break
        if tk > 512:
            tk = max(512, _round_up(tk // 2, 128))
        elif tm > 128:
            tm = max(128, _round_up(tm // 2, 128))
        else:
            label_resident = False
            break

    need = _need(tm, tk, label_resident)
    vmem_limit = int(min(budget, max(32 * 1024 * 1024, need + need // 4)))

    grid = (_cdiv(n_dst, tm), _cdiv(n_src, tk))
    k_rem = n_src % tk

    # --- label (small): zero-pad rows to a tk multiple (in-bounds), cast bf16 --
    n_src_lbl = _round_up(n_src, tk)
    label_c = label.astype(compute_dtype)
    if (n_src_lbl, c_pad) != (n_src, n_classes):
        label_c = jnp.pad(label_c, ((0, n_src_lbl - n_src), (0, c_pad - n_classes)))

    if label_resident:
        # Constant block index -> DMA'd once, VMEM-resident for the whole grid.
        # TODO(synk): pipeline_mode=pl.Buffered(1) would halve its VMEM footprint.
        label_spec = pl.BlockSpec((n_src_lbl, c_pad), lambda i, k: (0, 0))
    else:
        # Streamed per K step; large tm keeps re-fetch overhead ~c_pad/tm of prop.
        label_spec = pl.BlockSpec((tk, c_pad), lambda i, k: (k, 0))

    cost = pl.CostEstimate(
        flops=2 * n_dst * n_src * c_pad,
        transcendentals=0,
        bytes_accessed=(n_dst * n_src * prop_item
                        + n_src_lbl * c_pad * lbl_item * (1 if label_resident else grid[0])
                        + n_dst * c_pad * 4),
    )

    kernel = functools.partial(
        _lp1_kernel, tk=tk, n_src=n_src, k_rem=k_rem,
        label_resident=label_resident, compute_dtype=compute_dtype)

    out = pl.pallas_call(
        kernel,
        out_shape=jax.ShapeDtypeStruct((n_dst, c_pad), jnp.float32),
        grid_spec=pltpu.PrefetchScalarGridSpec(
            num_scalar_prefetch=0,
            grid=grid,
            in_specs=[
                pl.BlockSpec((tm, tk), lambda i, k: (i, k)),   # streamed prop tile
                label_spec,
            ],
            out_specs=pl.BlockSpec((tm, c_pad), lambda i, k: (i, 0)),
        ),
        compiler_params=pltpu.CompilerParams(
            dimension_semantics=("parallel", "arbitrary"),
            vmem_limit_bytes=vmem_limit,
        ),
        cost_estimate=cost,
    )(prop, label_c)

    return out[:, :n_classes]


def init_label(y_labels, train_mask, num_classes):
    """JAX equivalent of LP1.init_label: train-masked one-hot of the node labels."""
    # TODO(synk): could be folded into the kernel (scalar-prefetch y/mask +
    # in-kernel iota one-hot) to drop label HBM traffic entirely.
    onehot = jax.nn.one_hot(y_labels, num_classes, dtype=jnp.float32)
    return onehot * train_mask[:, None].astype(jnp.float32)


def lp1_forward(prop, y_labels, train_mask, num_classes, **kwargs):
    # data.x / data.adj_t exist on the module but are unused by forward compute.
    label = init_label(y_labels, train_mask, num_classes)
    return lp1_matmul_clamp(prop, label, **kwargs)


if __name__ == "__main__":
    # Small synthetic "graph": nodes=256, classes=8.
    nodes = 256
    num_classes = 8

    key = jax.random.PRNGKey(0)
    k_prop, k_y, k_mask = jax.random.split(key, 3)

    # Deterministic "propagation" matrix (the module's self.prop parameter).
    prop = jax.random.uniform(k_prop, (nodes, nodes), dtype=jnp.float32) * 0.05
    y_labels = jax.random.randint(k_y, (nodes,), 0, num_classes)
    train_mask = jax.random.bernoulli(k_mask, p=0.5, shape=(nodes,))

    # One-time parameter conversion (outside the per-call path): the kernel
    # then streams 2 B/elem of prop with no wrapper astype/pad passes.
    prop_bf16 = prop.astype(jnp.bfloat16)

    out = lp1_forward(prop_bf16, y_labels, train_mask, num_classes)
    out = jax.block_until_ready(out)

    # Reference checks against plain JAX.
    label_ref = init_label(y_labels, train_mask, num_classes)
    ref_f32 = jnp.clip(prop @ label_ref, 0.0, 1.0)
    ref_bf16 = jnp.clip(
        jnp.dot(prop.astype(jnp.bfloat16), label_ref.astype(jnp.bfloat16),
                preferred_element_type=jnp.float32),
        0.0, 1.0)

    assert out.shape == (nodes, num_classes)
    assert jnp.max(jnp.abs(out - ref_bf16)) < 1e-3, "mismatch vs bf16 reference"
    assert jnp.max(jnp.abs(out - ref_f32)) < 2e-2, "mismatch vs f32 reference"

    # Second path: f32 prop streamed as-is (in-kernel bf16 cast) at a
    # non-128-aligned size to exercise the partial M block and masked K tail.
    n2 = 200
    prop2 = jax.random.uniform(jax.random.PRNGKey(1), (n2, n2), dtype=jnp.float32) * 0.05
    y2 = jax.random.randint(jax.random.PRNGKey(2), (n2,), 0, num_classes)
    m2 = jax.random.bernoulli(jax.random.PRNGKey(3), p=0.5, shape=(n2,))
    out2 = jax.block_until_ready(lp1_forward(prop2, y2, m2, num_classes))
    lbl2 = init_label(y2, m2, num_classes)
    ref2 = jnp.clip(prop2 @ lbl2, 0.0, 1.0)
    assert out2.shape == (n2, num_classes)
    assert jnp.max(jnp.abs(out2 - ref2)) < 2e-2, "mismatch vs f32 reference (tail case)"

    print("KERNEL_OK")
</pallas_src>

<mosaic_0001>
module attributes {stable_mosaic.version = 11 : i64} {
  func.func @_lp1_kernel(%arg0: i32, %arg1: i32, %arg2: memref<128x256xbf16, #tpu.memory_space<vmem>>, %arg3: memref<256x128xbf16, #tpu.memory_space<vmem>>, %arg4: memref<128x128xf32, #tpu.memory_space<vmem>>) attributes {dimension_semantics = [#tpu.dimension_semantics<parallel>, #tpu.dimension_semantics<arbitrary>], iteration_bounds = array<i64: 2, 1>, scalar_prefetch = 0 : i64, scratch_operands = 0 : i64, tpu.core_type = #tpu.core_type<tc>, window_params = [{transform_indices = @transform_0, window_bounds = array<i64: 128, 256>}, {pipeline_mode = #tpu.pipeline_mode<synchronous>, transform_indices = @transform_1, window_bounds = array<i64: 256, 128>}, {transform_indices = @transform_2, window_bounds = array<i64: 128, 128>}]} {
    %c0_i32 = arith.constant 0 : i32
    %0 = arith.cmpi eq, %arg1, %c0_i32 : i32
    %1 = arith.extui %0 : i1 to i32
    %c0_i32_0 = arith.constant 0 : i32
    %2 = arith.cmpi ne, %1, %c0_i32_0 : i32
    scf.if %2 {
      %cst_9 = arith.constant 0.000000e+00 : f32
      %15 = vector.broadcast %cst_9 : f32 to vector<128x128xf32>
      %c0_10 = arith.constant 0 : index
      %c0_11 = arith.constant 0 : index
      %16 = vector.load %arg4[%c0_10, %c0_11] : memref<128x128xf32, #tpu.memory_space<vmem>>, vector<128x128xf32>
      tpu.vector_store %arg4[%c0_10, %c0_11], %15 {strides = array<i32>} : memref<128x128xf32, #tpu.memory_space<vmem>>, vector<128x128xf32>,
    } else {
    }
    %c0 = arith.constant 0 : index
    %c0_1 = arith.constant 0 : index
    %3 = vector.load %arg2[%c0, %c0_1] : memref<128x256xbf16, #tpu.memory_space<vmem>>, vector<128x256xbf16>
    %c256_i32 = arith.constant 256 : i32
    %4 = arith.muli %arg1, %c256_i32 : i32
    %5 = tpu.assume_multiple %4, 256 : i32
    %6 = arith.index_cast %5 : i32 to index
    %c0_2 = arith.constant 0 : index
    %7 = vector.load %arg3[%6, %c0_2] : memref<256x128xbf16, #tpu.memory_space<vmem>>, vector<256x128xbf16>
    %c0_3 = arith.constant 0 : index
    %c0_4 = arith.constant 0 : index
    %8 = vector.load %arg4[%c0_3, %c0_4] : memref<128x128xf32, #tpu.memory_space<vmem>>, vector<128x128xf32>
    %cst = arith.constant dense<0.000000e+00> : vector<128x128xf32>
    %9 = tpu.matmul %3, %7, %cst {dimension_numbers = #tpu.dot_dimension_numbers<[1], [0], [0], [1], [0, 0, 1, 1], [], []>} : vector<128x256xbf16>, vector<256x128xbf16>, vector<128x128xf32> -> vector<128x128xf32>
    %10 = arith.addf %8, %9 : vector<128x128xf32>
    %c0_5 = arith.constant 0 : index
    %c0_6 = arith.constant 0 : index
    %11 = vector.load %arg4[%c0_5, %c0_6] : memref<128x128xf32, #tpu.memory_space<vmem>>, vector<128x128xf32>
    tpu.vector_store %arg4[%c0_5, %c0_6], %10 {strides = array<i32>} : memref<128x128xf32, #tpu.memory_space<vmem>>, vector<128x128xf32>,
    %c0_i32_7 = arith.constant 0 : i32
    %12 = arith.cmpi eq, %arg1, %c0_i32_7 : i32
    %13 = arith.extui %12 : i1 to i32
    %c0_i32_8 = arith.constant 0 : i32
    %14 = arith.cmpi ne, %13, %c0_i32_8 : i32
    scf.if %14 {
      %c0_9 = arith.constant 0 : index
      %c0_10 = arith.constant 0 : index
      %15 = vector.load %arg4[%c0_9, %c0_10] : memref<128x128xf32, #tpu.memory_space<vmem>>, vector<128x128xf32>
      %cst_11 = arith.constant 0.000000e+00 : f32
      %cst_12 = arith.constant 1.000000e+00 : f32
      %16 = vector.broadcast %cst_11 : f32 to vector<128x128xf32>
      %17 = arith.maximumf %16, %15 : vector<128x128xf32>
      %18 = vector.broadcast %cst_12 : f32 to vector<128x128xf32>
      %19 = arith.minimumf %18, %17 : vector<128x128xf32>
      %c0_13 = arith.constant 0 : index
      %c0_14 = arith.constant 0 : index
      %20 = vector.load %arg4[%c0_13, %c0_14] : memref<128x128xf32, #tpu.memory_space<vmem>>, vector<128x128xf32>
      tpu.vector_store %arg4[%c0_13, %c0_14], %19 {strides = array<i32>} : memref<128x128xf32, #tpu.memory_space<vmem>>, vector<128x128xf32>,
    } else {
    }
    return
  }
  func.func @transform_0(%arg0: i32, %arg1: i32) -> (i32, i32) {
    %c0_i32 = arith.constant 0 : i32
    return %arg0, %arg1 : i32, i32
  }
  func.func @transform_1(%arg0: i32, %arg1: i32) -> (i32, i32) {
    %c0_i32 = arith.constant 0 : i32
    %c0_i32_0 = arith.constant 0 : i32
    %c0_i32_1 = arith.constant 0 : i32
    return %c0_i32, %c0_i32_0 : i32, i32
  }
  func.func @transform_2(%arg0: i32, %arg1: i32) -> (i32, i32) {
    %c0_i32 = arith.constant 0 : i32
    %c0_i32_0 = arith.constant 0 : i32
    return %arg0, %c0_i32 : i32, i32
  }
}

</mosaic_0001>

<bundles_post_ra>
// kernel: tpu_custom_call.1
= control target key start
LH: loop header
LB: loop body
LE: loop exit
PB: predicated region body
PF: predicated region fallthrough
CT: control target
= control target key end

     0   :  { %7 = vsyncpa [#allocation3], 0  ;;  %s1452_s0 = inlined_call_operand.hbm [shape: bf16[256,256], index: 0, kind: input, shape index: {}]   ;;  %s1453_s1 = inlined_call_operand.hbm [shape: bf16[256,128], index: 1, kind: input, shape index: {}]   ;;  %s1454_s2 = inlined_call_operand.hbm [shape: f32[256,128], index: 2, kind: output, shape index: {}]  }
   0x1   :  { %9 = vsyncpa [#allocation3 + $0x1], 0 }
   0x2   :  { %10 = vsyncpa [#allocation6], 0 }
   0x3   :  { %11 = vsyncpa [#allocation4], 0 }
   0x4   :  { %13 = vsyncpa [#allocation4 + $0x1], 0  ;;  %s1192_s9 = smov 0   ;;  %s1194_s10 = smov 0  }
   0x5   :  { %s1196_s11 = smov 0   ;;  %s1198_s12 = smov 0  }
   0x6   :  { %s1200_s13 = smov 0   ;;  %s1202_s14 = smov 0  }
   0x7 LB: > { %s769_s15 = sadd.s32 4294967295, %s1166_s14   ;;  %s770_s16 = sadd.s32 4294967294, %s1166_s14   ;;  %s1166_s14 = sphi %s1202_s14, %s19_s14   ;;  %s1162_s13 = sphi %s1200_s13, %s1478_s13   ;;  %s1158_s12 = sphi %s1198_s12, %s1477_s12   ;;  %s1154_s11 = sphi %s1196_s11, %s1476_s11   ;;  %s1150_s10 = sphi %s1194_s10, %s1475_s10   ;;  %s1146_s9 = sphi %s1192_s9, %s1474_s9  }
   0x8   : > { %p53_p0 = scmp.ne.s32.totalorder %s1150_s10, %s1146_s9  ;;  %p1226_p1 = scmp.eq.s32.totalorder %s769_s15, 0 }
   0x9   : > { %p1230_p2 = scmp.eq.s32.totalorder %s769_s15, 1  ;;  %p104_p3 = scmp.eq.s32.totalorder %s770_s16, 1 }
   0xa   : > { %s1459_s17 = scalar_select %p1226_p1, 1, 0 }
   0xb   : > { %s1460_s18 = scalar_select %p1230_p2, 1, 0 }
   0xc   : > { %p1236_p4 = por %p1226_p1, %p53_p0  ;;  %p771_p5 = scmp.ge.s32.totalorder %s1166_s14, 1 }
   0xd   : > { %p1241_p6 = por %p104_p3, %p53_p0  ;;  %p111_p7 = scmp.lt.s32.totalorder %s1166_s14, 3 }
   0xe   : > { %s1461_s19 = scalar_select %p1236_p4, 1, 0 }
   0xf   : > { %s1462_s20 = scalar_select %p1241_p6, 1, 0 }
  0x10   : > { %p1246_p8 = pnand %p771_p5, %p111_p7  ;;  %s1168_s22 = smov [#allocation5]  }
  0x11   : > { %s123_s23 = sshll.u32 %s1168_s22, 4  ;;  %s31_s25 = sadd.s32 1, %s1162_s13  ;;  %s124_s23 = int_to_ptr.vmem [resolvable:$true] %s123_s23 }
  0x12   : > { %s1463_s21 = scalar_select %p1246_p8, 1, 0 }
  0x13   : > { %p910_p9 = pneg %p1246_p8  ;;  %s1022_s28 = scalar_lea.hbm %s1453_s1, 2048 }
  0x14   : > { %p1023_p12 = scmp.ne.s32.totalorder %s1453_s1, %s1022_s28  ;;  %p1029_p5 = scmp.lt.u32.totalorder %s1022_s28, %s1453_s1 }
  0x15   : > { %p1255_p11 = pnand %p910_p9, %p1226_p1 }
  0x17   : > { %p1024_p13 = pneg %p1255_p11 }
  0x19   : > { %p1025_p0 = pnand %p1024_p13, %p1023_p12 }
  0x1b   : > { %p1026_p3 = pneg %p1025_p0 }
  0x1d   : > { %p1031_p7 = pnand %p1029_p5, %p1026_p3 }
  0x1f   : > { %1034 = shalt.err (!%p1031_p7)
}
  0x20   : > { %s1035_s5 = scalar_lea.vmem %s124_s23, 2048  ;;  %p1043_p1 = scmp.lt.s32.totalorder %s124_s23, %s124_s23 }
  0x21   : > { %p1036_p9 = scmp.ne.s32.totalorder %s124_s23, %s1035_s5  ;;  %p1044_p4 = scmp.lt.s32.totalorder %s1035_s5, %s1035_s5 }
  0x23   : > { %p1038_p10 = pnand %p1036_p9, %p1024_p13  ;;  %p1045_p8 = por %p1044_p4, %p1043_p1 }
  0x25   : > { %p1039_p6 = pneg %p1038_p10 }
  0x27   : > { %p1046_p2 = pnand %p1045_p8, %p1039_p6 }
  0x29   : > { %1049 = shalt.err (!%p1046_p2)
}
  0x2a   : > { %s1169_s6 = smov 64   ;;  %s1170_s7 = smov 4  }
  0x2b   : > { %913 = dma.hbm_to_vmem [thread:$0]  (!%p1255_p11), %s1453_s1, 2048, %s124_s23, [#allocation6], %s1169_s6, %s1169_s6, %s1170_s7  }
  0x2c   : > { %p33_p1 = scmp.ge.s32.totalorder %s31_s25, 2  ;;  %s40_s16 = sadd.s32 1, %s1154_s11 }
  0x2d   : > { %p47_p2 = scmp.ne.s32.totalorder %s1154_s11, %s1150_s10  ;;  %p48_p4 = scmp.eq.s32.totalorder %s1166_s14, 0 }
  0x2e   : > { %s1480_s25 = smov (%p33_p1, %s31_s25), 0  ;;  %p1466_p8 = scmp.ne.s32.totalorder %s1460_s18, 0 }
  0x2f   : > { %p1282_p6 = por %p48_p4, %p47_p2  ;;  %s35_s24 = ssub.s32 %s1162_s13, %s1480_s25 }
  0x30   : > { %p1288_p10 = por %p1466_p8, %p47_p2  ;;  %p923_p12 = scmp.lt.s32.totalorder %s1166_s14, 2 }
  0x31   : > { %p38_p11 = scmp.eq.s32.totalorder %s35_s24, 0  ;;  %s137_s23 = sand.u32 1, %s1154_s11  }
  0x32   : > { %s774_s27 = sshll.u32 %s137_s23, 7  ;;  %s820_s29 = sshll.u32 %s1162_s13, 11 }
  0x33   : > { %s1297_s28 = scalar_select %p38_p11, %s1154_s11, %s40_s16  }
  0x34   : > { %s1303_s4 = scalar_lea.hbm %s1452_s0, %s820_s29  ;;  %s141_s18 = scalar_lea.vmem [#allocation2], %s774_s27 }
  0x35   : > { %s151_s5 = sshll.u32 %s141_s18, 4  ;;  %p1309_p13 = pnand %p923_p12, %p1282_p6  ;;  %s1305_s5 = int_to_ptr.vmem [resolvable:$true] %s151_s5 }
  0x36   : > { %s1313_s7 = scalar_lea.sflag [#allocation3], %s137_s23  ;;  %s1050_s8 = scalar_lea.hbm %s1303_s4, 2048 }
  0x37   : > { %p1051_p0 = scmp.ne.s32.totalorder %s1303_s4, %s1050_s8  ;;  %p1052_p3 = pneg %p1309_p13 }
  0x38   : > { %s1055_s22 = scalar_lea.hbm %s1452_s0, 4096  ;;  %p1056_p9 = scmp.lt.u32.totalorder %s1303_s4, %s1452_s0 }
  0x39   : > { %p1053_p5 = pnand %p1052_p3, %p1051_p0  ;;  %p1057_p1 = scmp.lt.u32.totalorder %s1055_s22, %s1050_s8 }
  0x3a   : > { %p1059_p4 = scmp.lt.u32.totalorder %s1050_s8, %s1303_s4 }
  0x3b   : > { %p1054_p7 = pneg %p1053_p5  ;;  %p1058_p2 = por %p1057_p1, %p1056_p9 }
  0x3d   : > { %p1060_p6 = por %p1059_p4, %p1058_p2 }
  0x3f   : > { %p1061_p8 = pnand %p1060_p6, %p1054_p7 }
  0x41   : > { %1064 = shalt.err (!%p1061_p8)
}
  0x42   : > { %s1065_s23 = scalar_lea.vmem %s1305_s5, 2048  ;;  %s1171_s29 = smov [#allocation2]  }
  0x43   : > { %p1066_p12 = scmp.ne.s32.totalorder %s1305_s5, %s1065_s23  ;;  %s1070_s30 = sshll.u32 %s1171_s29, 4  ;;  %s1071_s30 = int_to_ptr.vmem [resolvable:$false] %s1070_s30 }
  0x44   : > { %s1072_s3 = scalar_lea.vmem %s1071_s30, 4096  ;;  %p1073_p5 = scmp.lt.s32.totalorder %s1305_s5, %s1071_s30 }
  0x45   : > { %p1068_p11 = pnand %p1066_p12, %p1052_p3  ;;  %p1074_p9 = scmp.lt.s32.totalorder %s1072_s3, %s1065_s23 }
  0x47   : > { %p1069_p0 = pneg %p1068_p11  ;;  %p1075_p1 = por %p1074_p9, %p1073_p5 }
  0x49   : > { %p1076_p2 = pnand %p1075_p1, %p1069_p0 }
  0x4b   : > { %1079 = shalt.err (!%p1076_p2)
}
  0x4c   : > { %s1172_s18 = smov 128   ;;  %s1173_s8 = smov 8  }
  0x4d   : > { %917 = dma.hbm_to_vmem [thread:$0]  (!%p1309_p13), %s1303_s4, 2048, %s1305_s5, %s1313_s7, %s1172_s18, %s1172_s18, %s1173_s8  }
  0x4e   : > { %p1469_p3 = scmp.ne.s32.totalorder %s1463_s21, 0 }
  0x4f   : > { %s1344_s15 = sand.u32 (!%p1469_p3), 1, %s1150_s10   ;;  %p1470_p7 = scmp.ne.s32.totalorder (!%p1469_p3), %s1461_s19, 0 }
  0x50   : > { %163 = sbr.rel (%p1469_p3) target bundleno = 384 (0x180), region = 28  ;;  %s779_s16 = sshll.u32 (!%p1469_p3), %s1344_s15, 7 }
  0x51   : > { %s166_s22 = scalar_lea.sflag (!%p1469_p3), [#allocation3], %s1344_s15  ;;  %s1350_s24 = scalar_lea.vmem (!%p1469_p3), [#allocation2], %s779_s16 }
  0x57   : > { %1133 = dma.done.wait (%p1470_p7), %s166_s22, 2048  }
  0x58   : > { %1135 = vsyncadd (%p1470_p7), %s166_s22, 4294965248  ;;  %p1471_p13 = scmp.ne.s32.totalorder %s1459_s17, 0 }
  0x5a   : > { %1137 = dma.done.wait (%p1471_p13), [#allocation6], 2048  }
  0x5b   : > { %1139 = vsyncadd (%p1471_p13), [#allocation6], 4294965248  ;;  %v982_v0 = vld [vmem:[#allocation5 + $0x40] sm:$0xff]   ;;  %v984_v2 = vld [vmem:[#allocation5 + $0x48] sm:$0xff]   ;;  %s1378_s17 = scalar_lea.vmem [#allocation7], %s779_s16  ;;  %s821_s19 = sshll.u32 %s1158_s12, 11 }
  0x5c   : > { %v983_v1 = vld [vmem:[#allocation5] sm:$0xff]   ;;  %822 = vmatprep.subr.bf16.mxu0 %v982_v0  ;;  %886 = vmatprep.subr.bf16.mxu1 %v982_v0  ;;  %v985_v3 = vld [vmem:[#allocation5 + $0x8] sm:$0xff]   ;;  %v986_v4 = vld [vmem:[#allocation5 + $0x50] sm:$0xff]   ;;  %s673_s21 = sshll.u32 %s1378_s17, 4  ;;  %s1397_s6 = scalar_lea.hbm %s1454_s2, %s821_s19  ;;  %s1399_s21 = int_to_ptr.vmem [resolvable:$true] %s673_s21 }
  0x5d   : > { %823 = vmatpush3.bf16.msra.mxu0 %v983_v1  ;;  %894 = vmatpush3.bf16.msra.mxu1 %v983_v1  ;;  %v987_v5 = vld [vmem:[#allocation5 + $0x10] sm:$0xff]   ;;  %v988_v6 = vld [vmem:[#allocation5 + $0x58] sm:$0xff]   ;;  %v990_v8 = vld [vmem:[#allocation5 + $0x60] sm:$0xff]   ;;  %s660_s12 = scalar_lea.sflag [#allocation4], %s1344_s15  ;;  %s1080_s7 = scalar_lea.vmem %s1399_s21, 2048 }
  0x5e   : > { %824 = vmatprep.subr.bf16.mxu0 %v984_v2  ;;  %887 = vmatprep.subr.bf16.mxu1 %v984_v2  ;;  %v989_v7 = vld [vmem:[#allocation5 + $0x18] sm:$0xff]   ;;  %v991_v9 = vld [vmem:[#allocation5 + $0x20] sm:$0xff]   ;;  %v992_v10 = vld [vmem:[#allocation5 + $0x68] sm:$0xff]   ;;  %p1081_p4 = scmp.ne.s32.totalorder %s1399_s21, %s1080_s7  ;;  %s1174_s27 = smov [#allocation7]  }
  0x5f   : > { %v1000_v11 = vld [vmem:[%s1350_s24 + $0x4] ss:$8 sps:$4 sm:$0xff]   ;;  %v994_v14 = vld [vmem:[#allocation5 + $0x70] sm:$0xff]   ;;  %v996_v16 = vld [vmem:[#allocation5 + $0x78] sm:$0xff]   ;;  %s1084_s23 = sshll.u32 %s1174_s27, 4  ;;  %s1085_s23 = int_to_ptr.vmem [resolvable:$false] %s1084_s23 }
  0x60   : > { %v1003_v12 = vld [vmem:[%s1350_s24 + $0x44] ss:$8 sps:$4 sm:$0xff]   ;;  %495 = vmatprep.mubr.bf16.mxu0 %v1000_v11  ;;  %v995_v15 = vld [vmem:[#allocation5 + $0x30] sm:$0xff]   ;;  %v997_v17 = vld [vmem:[#allocation5 + $0x38] sm:$0xff]   ;;  %p1082_p6 = pnand %p1081_p4, %p1288_p10  ;;  %s1086_s29 = scalar_lea.vmem %s1085_s23, 4096 }
  0x61   : > { %825 = vmatpush3.bf16.msra.mxu0 %v985_v3  ;;  %895 = vmatpush3.bf16.msra.mxu1 %v985_v3  ;;  %v993_v13 = vld [vmem:[#allocation5 + $0x28] sm:$0xff]   ;;  %v1004_v20 = vld [vmem:[%s1350_s24 + $0x14] ss:$8 sps:$4 sm:$0xff]   ;;  %v1008_v22 = vld [vmem:[%s1350_s24 + $0x10] ss:$8 sps:$4 sm:$0xff]   ;;  %p1087_p12 = scmp.lt.s32.totalorder %s1399_s21, %s1085_s23  ;;  %p1088_p11 = scmp.lt.s32.totalorder %s1086_s29, %s1080_s7 }
  0x62   : > { %826 = vmatprep.subr.bf16.mxu0 %v986_v4  ;;  %888 = vmatprep.subr.bf16.mxu1 %v986_v4  ;;  %v998_v18 = vld [vmem:[%s1350_s24] ss:$8 sps:$4 sm:$0xff]   ;;  %v1006_v21 = vld [vmem:[%s1350_s24 + $0x54] ss:$8 sps:$4 sm:$0xff]   ;;  %v1009_v23 = vld [vmem:[%s1350_s24 + $0x50] ss:$8 sps:$4 sm:$0xff]   ;;  %p1083_p8 = pneg %p1082_p6 }
  0x63   : > { %527 = vmatprep.mubr.bf16.mxu1 %v1003_v12  ;;  %v1001_v19 = vld [vmem:[%s1350_s24 + $0x40] ss:$8 sps:$4 sm:$0xff]   ;;  %v1010_v24 = vld [vmem:[%s1350_s24 + $0x24] ss:$8 sps:$4 sm:$0xff]   ;;  %v1016_v28 = vld [vmem:[%s1350_s24 + $0x34] ss:$8 sps:$4 sm:$0xff]   ;;  %p1089_p0 = por %p1088_p11, %p1087_p12 }
  0x64   : > { %v1012_v25 = vld [vmem:[%s1350_s24 + $0x64] ss:$8 sps:$4 sm:$0xff]   ;;  %v1014_v26 = vld [vmem:[%s1350_s24 + $0x20] ss:$8 sps:$4 sm:$0xff]   ;;  %v1018_v29 = vld [vmem:[%s1350_s24 + $0x74] ss:$8 sps:$4 sm:$0xff]  }
  0x65   : > { %827 = vmatpush3.bf16.msra.mxu0 %v987_v5  ;;  %896 = vmatpush3.bf16.msra.mxu1 %v987_v5  ;;  %v1015_v27 = vld [vmem:[%s1350_s24 + $0x60] ss:$8 sps:$4 sm:$0xff]   ;;  %v1020_v30 = vld [vmem:[%s1350_s24 + $0x30] ss:$8 sps:$4 sm:$0xff]   ;;  %p1090_p5 = pnand %p1089_p0, %p1083_p8 }
  0x66   : > { %828 = vmatprep.subr.bf16.mxu0 %v988_v6  ;;  %889 = vmatprep.subr.bf16.mxu1 %v988_v6  ;;  %v1021_v31 = vld [vmem:[%s1350_s24 + $0x70] ss:$8 sps:$4 sm:$0xff]  }
  0x69   : > { %829 = vmatpush3.bf16.msra.mxu0 %v989_v7  ;;  %897 = vmatpush3.bf16.msra.mxu1 %v989_v7 }
  0x6a   : > { %830 = vmatprep.subr.bf16.mxu0 %v990_v8  ;;  %890 = vmatprep.subr.bf16.mxu1 %v990_v8 }
  0x6d   : > { %831 = vmatpush3.bf16.msra.mxu0 %v991_v9  ;;  %898 = vmatpush3.bf16.msra.mxu1 %v991_v9 }
  0x6e   : > { %832 = vmatprep.subr.bf16.mxu0 %v992_v10  ;;  %891 = vmatprep.subr.bf16.mxu1 %v992_v10 }
  0x71   : > { %833 = vmatpush3.bf16.msra.mxu0 %v993_v13  ;;  %899 = vmatpush3.bf16.msra.mxu1 %v993_v13 }
  0x72   : > { %834 = vmatprep.subr.bf16.mxu0 %v994_v14  ;;  %892 = vmatprep.subr.bf16.mxu1 %v994_v14 }
  0x75   : > { %835 = vmatpush3.bf16.msra.mxu0 %v995_v15  ;;  %900 = vmatpush3.bf16.msra.mxu1 %v995_v15 }
  0x76   : > { %836 = vmatprep.subr.bf16.mxu0 %v996_v16  ;;  %893 = vmatprep.subr.bf16.mxu1 %v996_v16 }
  0x79   : > { %837 = vmatpush3.bf16.msra.mxu0 %v997_v17  ;;  %901 = vmatpush3.bf16.msra.mxu1 %v997_v17 }
  0x7c   : > { %496 = vmatmul.mubr.bf16.vlgmr.msra.gmra.mrb[0].mxu0 %v998_v18  ;;  %528 = vmatmul.mubr.bf16.vlgmr.msra.gmra.mrb[0].mxu1 %v1001_v19 }
  0x7d   : > { %503 = vmatprep.mubr.bf16.mxu0 %v1004_v20  ;;  %535 = vmatprep.mubr.bf16.mxu1 %v1006_v21 }
  0x84   : > { %504 = vmatmul.mubr.bf16.gmra.mrb[4].mxu0 %v1008_v22  ;;  %536 = vmatmul.mubr.bf16.gmra.mrb[4].mxu1 %v1009_v23 }
  0x85   : > { %511 = vmatprep.mubr.bf16.mxu0 %v1010_v24  ;;  %543 = vmatprep.mubr.bf16.mxu1 %v1012_v25 }
  0x8c   : > { %512 = vmatmul.mubr.bf16.gmra.mrb[8].mxu0 %v1014_v26  ;;  %544 = vmatmul.mubr.bf16.gmra.mrb[8].mxu1 %v1015_v27 }
  0x8d   : > { %519 = vmatprep.mubr.bf16.mxu0 %v1016_v28  ;;  %551 = vmatprep.mubr.bf16.mxu1 %v1018_v29 }
  0x94   : > { %520 = vmatmul.mubr.bf16.gmra.mrb[12].mxu0 %v1020_v30  ;;  %552 = vmatmul.mubr.bf16.gmra.mrb[12].mxu1 %v1021_v31 }
 0x14f   : > { %v838_v32 = vpop.f32.mrb[0].mxu0  ;;  %v862_v33 = vpop.f32.mrb[0].mxu1 }
 0x150   : > { %v839_v34 = vpop.f32.mrb[1].mxu0  ;;  %v863_v35 = vpop.f32.mrb[1].mxu1 }
 0x151   : > { %v840_v36 = vadd.f32 %v839_v34, %v838_v32  ;;  %v864_v37 = vadd.f32 %v863_v35, %v862_v33  ;;  %v841_v38 = vpop.f32.mrb[2].mxu0  ;;  %v865_v39 = vpop.f32.mrb[2].mxu1 }
 0x152   : > { %v842_v40 = vpop.f32.mrb[3].mxu0  ;;  %v866_v41 = vpop.f32.mrb[3].mxu1 }
 0x153   : > { %v843_v42 = vadd.f32 %v842_v40, %v841_v38  ;;  %v867_v43 = vadd.f32 %v866_v41, %v865_v39  ;;  %v611_v44 = vmax.f32 %v840_v36, 0.0  ;;  %v619_v45 = vmax.f32 %v864_v37, 0.0 }
 0x155   : > { %v627_v46 = vmin.f32 %v611_v44, 1.0  ;;  %v635_v47 = vmin.f32 %v619_v45, 1.0  ;;  %v612_v48 = vmax.f32 %v843_v42, 0.0  ;;  %v620_v49 = vmax.f32 %v867_v43, 0.0 }
 0x157   : > { %v844_v50 = vpop.f32.mrb[4].mxu0  ;;  %v868_v51 = vpop.f32.mrb[4].mxu1  ;;  %643 = vst [vmem:[%s1378_s17] sm:$0xff] %v627_v46  ;;  %651 = vst [vmem:[%s1378_s17 + $0x40] sm:$0xff] %v635_v47  ;;  %v628_v54 = vmin.f32 %v612_v48, 1.0  ;;  %v636_v55 = vmin.f32 %v620_v49, 1.0 }
 0x158   : > { %v845_v52 = vpop.f32.mrb[5].mxu0  ;;  %v869_v53 = vpop.f32.mrb[5].mxu1 }
 0x159   : > { %v846_v56 = vadd.f32 %v845_v52, %v844_v50  ;;  %v870_v57 = vadd.f32 %v869_v53, %v868_v51  ;;  %v847_v58 = vpop.f32.mrb[6].mxu0  ;;  %v871_v59 = vpop.f32.mrb[6].mxu1  ;;  %644 = vst [vmem:[%s1378_s17 + $0x8] sm:$0xff] %v628_v54  ;;  %652 = vst [vmem:[%s1378_s17 + $0x48] sm:$0xff] %v636_v55 }
 0x15a   : > { %v848_v60 = vpop.f32.mrb[7].mxu0  ;;  %v872_v61 = vpop.f32.mrb[7].mxu1 }
 0x15b   : > { %v849_v62 = vadd.f32 %v848_v60, %v847_v58  ;;  %v873_v63 = vadd.f32 %v872_v61, %v871_v59  ;;  %v613_v0 = vmax.f32 %v846_v56, 0.0  ;;  %v621_v1 = vmax.f32 %v870_v57, 0.0 }
 0x15d   : > { %v629_v2 = vmin.f32 %v613_v0, 1.0  ;;  %v637_v3 = vmin.f32 %v621_v1, 1.0  ;;  %v614_v4 = vmax.f32 %v849_v62, 0.0  ;;  %v622_v5 = vmax.f32 %v873_v63, 0.0 }
 0x15f   : > { %v850_v6 = vpop.f32.mrb[8].mxu0  ;;  %v874_v7 = vpop.f32.mrb[8].mxu1  ;;  %645 = vst [vmem:[%s1378_s17 + $0x10] sm:$0xff] %v629_v2  ;;  %653 = vst [vmem:[%s1378_s17 + $0x50] sm:$0xff] %v637_v3  ;;  %v630_v10 = vmin.f32 %v614_v4, 1.0  ;;  %v638_v11 = vmin.f32 %v622_v5, 1.0 }
 0x160   : > { %v851_v8 = vpop.f32.mrb[9].mxu0  ;;  %v875_v9 = vpop.f32.mrb[9].mxu1 }
 0x161   : > { %v852_v12 = vadd.f32 %v851_v8, %v850_v6  ;;  %v876_v13 = vadd.f32 %v875_v9, %v874_v7  ;;  %v853_v14 = vpop.f32.mrb[10].mxu0  ;;  %v877_v15 = vpop.f32.mrb[10].mxu1  ;;  %646 = vst [vmem:[%s1378_s17 + $0x18] sm:$0xff] %v630_v10  ;;  %654 = vst [vmem:[%s1378_s17 + $0x58] sm:$0xff] %v638_v11 }
 0x162   : > { %v854_v16 = vpop.f32.mrb[11].mxu0  ;;  %v878_v17 = vpop.f32.mrb[11].mxu1 }
 0x163   : > { %v855_v18 = vadd.f32 %v854_v16, %v853_v14  ;;  %v879_v19 = vadd.f32 %v878_v17, %v877_v15  ;;  %v615_v20 = vmax.f32 %v852_v12, 0.0  ;;  %v623_v21 = vmax.f32 %v876_v13, 0.0 }
 0x165   : > { %v631_v22 = vmin.f32 %v615_v20, 1.0  ;;  %v639_v23 = vmin.f32 %v623_v21, 1.0  ;;  %v616_v24 = vmax.f32 %v855_v18, 0.0  ;;  %v624_v25 = vmax.f32 %v879_v19, 0.0 }
 0x167   : > { %v856_v26 = vpop.f32.mrb[12].mxu0  ;;  %v880_v27 = vpop.f32.mrb[12].mxu1  ;;  %647 = vst [vmem:[%s1378_s17 + $0x20] sm:$0xff] %v631_v22  ;;  %655 = vst [vmem:[%s1378_s17 + $0x60] sm:$0xff] %v639_v23  ;;  %v632_v30 = vmin.f32 %v616_v24, 1.0  ;;  %v640_v31 = vmin.f32 %v624_v25, 1.0 }
 0x168   : > { %v857_v28 = vpop.f32.mrb[13].mxu0  ;;  %v881_v29 = vpop.f32.mrb[13].mxu1 }
 0x169   : > { %v858_v32 = vadd.f32 %v857_v28, %v856_v26  ;;  %v882_v33 = vadd.f32 %v881_v29, %v880_v27  ;;  %v859_v34 = vpop.f32.mrb[14].mxu0  ;;  %v883_v35 = vpop.f32.mrb[14].mxu1  ;;  %648 = vst [vmem:[%s1378_s17 + $0x28] sm:$0xff] %v632_v30  ;;  %656 = vst [vmem:[%s1378_s17 + $0x68] sm:$0xff] %v640_v31 }
 0x16a   : > { %v860_v36 = vpop.f32.mrb[15].mxu0  ;;  %v884_v37 = vpop.f32.mrb[15].mxu1 }
 0x16b   : > { %v861_v38 = vadd.f32 %v860_v36, %v859_v34  ;;  %v885_v39 = vadd.f32 %v884_v37, %v883_v35  ;;  %v617_v40 = vmax.f32 %v858_v32, 0.0  ;;  %v625_v41 = vmax.f32 %v882_v33, 0.0 }
 0x16d   : > { %v633_v42 = vmin.f32 %v617_v40, 1.0  ;;  %v641_v43 = vmin.f32 %v625_v41, 1.0  ;;  %v618_v44 = vmax.f32 %v861_v38, 0.0  ;;  %v626_v45 = vmax.f32 %v885_v39, 0.0 }
 0x16f   : > { %649 = vst [vmem:[%s1378_s17 + $0x30] sm:$0xff] %v633_v42  ;;  %657 = vst [vmem:[%s1378_s17 + $0x70] sm:$0xff] %v641_v43  ;;  %v634_v46 = vmin.f32 %v618_v44, 1.0  ;;  %v642_v47 = vmin.f32 %v626_v45, 1.0 }
 0x171   : > { %650 = vst [vmem:[%s1378_s17 + $0x38] sm:$0xff] %v634_v46  ;;  %658 = vst [vmem:[%s1378_s17 + $0x78] sm:$0xff] %v642_v47 }
 0x172   : > { %1093 = shalt.err (!%p1090_p5)
}
 0x173   : > { %s1094_s30 = scalar_lea.hbm %s1397_s6, 2048  ;;  %s1098_s8 = scalar_lea.hbm %s1454_s2, 4096 }
 0x174   : > { %p1095_p9 = scmp.ne.s32.totalorder %s1397_s6, %s1094_s30  ;;  %p1099_p3 = scmp.lt.u32.totalorder %s1397_s6, %s1454_s2 }
 0x175   : > { %p1100_p7 = scmp.lt.u32.totalorder %s1098_s8, %s1094_s30  ;;  %p1102_p4 = scmp.lt.u32.totalorder %s1094_s30, %s1397_s6 }
 0x176   : > { %p1096_p1 = pnand %p1095_p9, %p1288_p10 }
 0x177   : > { %p1101_p13 = por %p1100_p7, %p1099_p3 }
 0x178   : > { %p1097_p2 = pneg %p1096_p1 }
 0x179   : > { %p1103_p6 = por %p1102_p4, %p1101_p13 }
 0x17b   : > { %p1104_p8 = pnand %p1103_p6, %p1097_p2 }
 0x17d   : > { %1107 = shalt.err (!%p1104_p8)
}
 0x17e   : > { %s1175_s24 = smov 128   ;;  %s1176_s17 = smov 8  }
 0x17f   : > { %908 = dma.vmem_to_hbm [thread:$0]  (%p1288_p10), %s1399_s21, 2048, %s1397_s6, %s660_s12, %s1175_s24, %s1175_s24, %s1176_s17  }
 0x180 PF: > { %s688_s19 = sand.u32 1, %s1146_s9   ;;  %p1472_p12 = scmp.ne.s32.totalorder %s1462_s20, 0 }
 0x181   : > { %p1473_p11 = scmp.ge.s32.totalorder %s1166_s14, 2  ;;  %s689_s4 = scalar_lea.sflag [#allocation4], %s688_s19 }
 0x183   : > { %p919_p0 = pnand %p1473_p11, %p1472_p12 }
 0x185   : > { %1141 = dma.done.wait (!%p919_p0), %s689_s4, 2048  }
 0x186   : > { %1143 = vsyncadd (!%p919_p0), %s689_s4, 4294965248  ;;  %s19_s14 = sadd.s32 1, %s1166_s14   ;;  %s1474_s9 = smov %s1150_s10 }
 0x187   : > { %p16_p5 = scmp.ge.s32.totalorder %s19_s14, 4   ;;  %s1475_s10 = smov %s1154_s11 }
 0x188   : > { %s1476_s11 = smov %s1297_s28  ;;  %s1477_s12 = smov %s1162_s13 }
 0x189   : > { %s1478_s13 = smov %s1480_s25  ;;  %18 = sbr.rel (!%p16_p5) target bundleno = 7 (0x7), region = 86 }
 0x190   :  { %694 = vsyncpa [#allocation3], 1 }
 0x191   :  { %696 = vsyncpa [#allocation3 + $0x1], 1 }
 0x192   :  { %697 = vsyncpa [#allocation6], 1 }
 0x193   :  { %698 = vsyncpa [#allocation4], 1 }
 0x194   :  { %700 = vsyncpa [#allocation4 + $0x1], 1 }

</bundles_post_ra>
